<compile_context>
chip_gen: v7x
topology: tpu7x:2x2x1
jax: 0.10.0
libtpu: 0.0.40
codegen_flags: <defaults>
</compile_context>

<pallas_src>
import functools

import jax
import jax.numpy as jnp
from jax.experimental import pallas as pl
from jax.experimental.pallas import tpu as pltpu


def _partial_fmaps_kernel(cfp_ref, cpf_ref, dmask_ref, out_ref):
    """One batch block of BB samples.

    cfp_ref   : VMEM (BB, K, K) f32   C_fp block
    cpf_ref   : VMEM (BB, K, K) f32   C_pf block (natural layout, no transpose)
    dmask_ref : VMEM (BB, K)    f32   1.0 for i <= r[b], else 0.0 (0 for padding)
    out_ref   : VMEM (8, 128)   f32   lane 0 -> sum_b l_bij, lane 1 -> sum_b l_orth
    """
    cfp = cfp_ref[...]
    cpf = cpf_ref[...]
    dmask = dmask_ref[...]
    _, K, _ = cfp.shape

    # Per-step constants (hoisted out of the per-sample work): identity mask.
    row = jax.lax.broadcasted_iota(jnp.int32, (K, K), 0)
    col = jax.lax.broadcasted_iota(jnp.int32, (K, K), 1)
    eye = (row == col).astype(jnp.float32)                    # (K, K)

    # Per-sample target E_r[b] = diag(dmask[b]) (r[b]+1 ones on the diagonal).
    target = dmask[:, :, None] * eye[None, :, :]              # (BB, K, K)

    # Two batched MXU products; no concat, no RHS transpose for the bij term.
    m_bij = jnp.einsum('bij,bjk->bik', cfp, cpf,
                       preferred_element_type=jnp.float32)
    d_bij = m_bij - target
    l_bij = jnp.sum(d_bij * d_bij)                            # block partial sum

    m_orth = jnp.einsum('bij,bkj->bik', cfp, cfp,
                        preferred_element_type=jnp.float32)
    d_orth = m_orth - target
    l_orth = jnp.sum(d_orth * d_orth)                         # block partial sum

    # Lane/sublane-dense output tile (unmasked store); wrapper reads [0,0],[0,1].
    lane = jax.lax.broadcasted_iota(jnp.int32, (8, 128), 1)
    out_ref[...] = jnp.where(lane == 0, l_bij,
                             jnp.where(lane == 1, l_orth, 0.0))


def partial_fmaps_loss(C_fp, C_pf, evals_full, evals_partial,
                       w_bij=1.0, w_orth=1.0, block_b=8):
    """JAX/Pallas equivalent of PartialFmapsLoss.forward.

    Args:
      C_fp:          (B, K, K)
      C_pf:          (B, K, K)
      evals_full:    (B, K)
      evals_partial: (B, K)
      w_bij, w_orth: static Python floats >= 0 (gating mirrors the PyTorch
                     `if w > 0` branches).
      block_b:       samples per grid step (multiple of 8); batch is zero-padded
                     up to a multiple of block_b.
    Returns:
      dict with 'l_bij' and 'l_orth' scalars (mean over batch; identity at B=1).
    """
    assert w_bij >= 0 and w_orth >= 0, 'Loss weight should be non-negative.'
    assert block_b % 8 == 0, 'block_b must be a multiple of 8 (sublane tiling).'
    B, K, K2 = C_fp.shape
    assert K == K2 and C_pf.shape == (B, K, K)

    # TODO(synk): for B == 1 (the module's stated contract) a plain fused-XLA
    # path would avoid pure kernel-launch overhead; kept on the kernel path
    # here so the Pallas code is exercised.

    cfp = C_fp.astype(jnp.float32)
    cpf = C_pf.astype(jnp.float32)
    ef = evals_full.reshape(B, -1).astype(jnp.float32)
    ep = evals_partial.reshape(B, -1).astype(jnp.float32)

    # r per sample (PyTorch: min((evals_partial < evals_full.max()).sum(), K-1)),
    # converted to a (B, K) diagonal mask with r+1 ones (indices 0..r), matching
    # eye[torch.arange(0, r + 1), torch.arange(0, r + 1)] = 1.
    r = jnp.minimum(
        jnp.sum((ep < jnp.max(ef, axis=-1, keepdims=True)).astype(jnp.int32),
                axis=-1),
        K - 1)                                                      # (B,)
    dmask = (jnp.arange(K)[None, :] <= r[:, None]).astype(jnp.float32)  # (B, K)

    # Pad the batch to a multiple of block_b; padded samples are all-zero
    # (C = 0, dmask = 0) and contribute exactly 0 to the block partial sums.
    BB = block_b
    nblk = int(pl.cdiv(B, BB))
    B_pad = nblk * BB
    if B_pad != B:
        pad = B_pad - B
        cfp = jnp.pad(cfp, ((0, pad), (0, 0), (0, 0)))
        cpf = jnp.pad(cpf, ((0, pad), (0, 0), (0, 0)))
        dmask = jnp.pad(dmask, ((0, pad), (0, 0)))

    out = pl.pallas_call(
        _partial_fmaps_kernel,
        grid=(nblk,),
        in_specs=[
            pl.BlockSpec((BB, K, K), lambda i: (i, 0, 0)),   # C_fp block
            pl.BlockSpec((BB, K, K), lambda i: (i, 0, 0)),   # C_pf block
            pl.BlockSpec((BB, K), lambda i: (i, 0)),         # diag mask block
        ],
        out_specs=pl.BlockSpec((None, 8, 128), lambda i: (i, 0, 0)),
        out_shape=jax.ShapeDtypeStruct((nblk, 8, 128), jnp.float32),
        compiler_params=pltpu.CompilerParams(
            dimension_semantics=("parallel",)),
    )(cfp, cpf, dmask)

    # Finish the reduction in the wrapper: sum of block partial sums / B
    # (== torch.mean over the batch; identity for B == 1).
    l_bij_raw = jnp.sum(out[:, 0, 0]) / B
    l_orth_raw = jnp.sum(out[:, 0, 1]) / B

    l_bij = w_bij * l_bij_raw if w_bij > 0 else 0.0
    # NOTE: the original PyTorch module scales the orthogonality term by w_bij
    # (not w_orth) -- quirk preserved intentionally; it is only gated by w_orth.
    l_orth = w_bij * l_orth_raw if w_orth > 0 else 0.0
    return {"l_bij": l_bij, "l_orth": l_orth}


def _reference_single(cfp, cpf, ef, ep, w_bij=1.0):
    """Pure-JAX transcription of the PyTorch module for one batch element."""
    K = cfp.shape[0]
    r = jnp.minimum(jnp.sum(ep < ef.max()), K - 1)
    idx = jnp.arange(K)
    eye = jnp.where((idx[:, None] == idx[None, :]) & (idx[:, None] <= r),
                    1.0, 0.0)
    l_bij = w_bij * jnp.sum(jnp.abs(cfp @ cpf - eye) ** 2)
    l_orth = w_bij * jnp.sum(jnp.abs(cfp @ cfp.T - eye) ** 2)
    return l_bij, l_orth


if __name__ == "__main__":
    key = jax.random.PRNGKey(0)
    K = 32  # spectral resolution (number of eigen-basis functions)

    k1, k2, k3, k4, k5, k6, k7, k8 = jax.random.split(key, 8)

    # --- batch size 1: exactly the original module's contract ---------------
    C_fp = jax.random.normal(k1, (1, K, K), dtype=jnp.float32)
    C_pf = jax.random.normal(k2, (1, K, K), dtype=jnp.float32)
    evals_full = jnp.sort(
        jax.random.uniform(k3, (1, K), dtype=jnp.float32) * 10.0, axis=-1)
    evals_partial = jnp.sort(
        jax.random.uniform(k4, (1, K), dtype=jnp.float32) * 12.0, axis=-1)

    out = partial_fmaps_loss(C_fp, C_pf, evals_full, evals_partial,
                             w_bij=1.0, w_orth=1.0)
    out = jax.block_until_ready(out)

    ref_bij, ref_orth = _reference_single(C_fp[0], C_pf[0],
                                          evals_full[0], evals_partial[0])
    assert jnp.allclose(out["l_bij"], ref_bij, rtol=5e-4, atol=1e-2), \
        (out["l_bij"], ref_bij)
    assert jnp.allclose(out["l_orth"], ref_orth, rtol=5e-4, atol=1e-2), \
        (out["l_orth"], ref_orth)

    # --- batched path: multi-block grid (B > block_b) with padding ----------
    B = 10
    C_fp_b = jax.random.normal(k5, (B, K, K), dtype=jnp.float32)
    C_pf_b = jax.random.normal(k6, (B, K, K), dtype=jnp.float32)
    ef_b = jnp.sort(
        jax.random.uniform(k7, (B, K), dtype=jnp.float32) * 10.0, axis=-1)
    ep_b = jnp.sort(
        jax.random.uniform(k8, (B, K), dtype=jnp.float32) * 12.0, axis=-1)

    out_b = partial_fmaps_loss(C_fp_b, C_pf_b, ef_b, ep_b,
                               w_bij=1.0, w_orth=1.0, block_b=8)
    out_b = jax.block_until_ready(out_b)

    refs = [_reference_single(C_fp_b[i], C_pf_b[i], ef_b[i], ep_b[i])
            for i in range(B)]
    ref_bij_b = jnp.mean(jnp.stack([x[0] for x in refs]))
    ref_orth_b = jnp.mean(jnp.stack([x[1] for x in refs]))
    assert jnp.allclose(out_b["l_bij"], ref_bij_b, rtol=5e-4, atol=1e-2), \
        (out_b["l_bij"], ref_bij_b)
    assert jnp.allclose(out_b["l_orth"], ref_orth_b, rtol=5e-4, atol=1e-2), \
        (out_b["l_orth"], ref_orth_b)

    print("KERNEL_OK")
</pallas_src>

<mosaic_0001>
module attributes {stable_mosaic.version = 11 : i64} {
  func.func @_partial_fmaps_kernel(%arg0: i32, %arg1: memref<8x32x32xf32, #tpu.memory_space<vmem>>, %arg2: memref<8x32x32xf32, #tpu.memory_space<vmem>>, %arg3: memref<8x32xf32, #tpu.memory_space<vmem>>, %arg4: memref<1x8x128xf32, #tpu.memory_space<vmem>>) attributes {dimension_semantics = [#tpu.dimension_semantics<parallel>], iteration_bounds = array<i64: 1>, scalar_prefetch = 0 : i64, scratch_operands = 0 : i64, tpu.core_type = #tpu.core_type<tc>, window_params = [{transform_indices = @transform_0, window_bounds = array<i64: 8, 32, 32>}, {transform_indices = @transform_1, window_bounds = array<i64: 8, 32, 32>}, {transform_indices = @transform_2, window_bounds = array<i64: 8, 32>}, {transform_indices = @transform_3, window_bounds = array<i64: 1, 8, 128>}]} {
    %c0 = arith.constant 0 : index
    %c0_0 = arith.constant 0 : index
    %c0_1 = arith.constant 0 : index
    %0 = vector.load %arg1[%c0, %c0_0, %c0_1] : memref<8x32x32xf32, #tpu.memory_space<vmem>>, vector<8x32x32xf32>
    %c0_2 = arith.constant 0 : index
    %c0_3 = arith.constant 0 : index
    %c0_4 = arith.constant 0 : index
    %1 = vector.load %arg2[%c0_2, %c0_3, %c0_4] : memref<8x32x32xf32, #tpu.memory_space<vmem>>, vector<8x32x32xf32>
    %c0_5 = arith.constant 0 : index
    %c0_6 = arith.constant 0 : index
    %2 = vector.load %arg3[%c0_5, %c0_6] : memref<8x32xf32, #tpu.memory_space<vmem>>, vector<8x32xf32>
    %3 = tpu.iota {dimensions = array<i32: 0>} : vector<32x32xi32>
    %4 = tpu.iota {dimensions = array<i32: 1>} : vector<32x32xi32>
    %5 = arith.cmpi eq, %3, %4 : vector<32x32xi32>
    %6 = arith.extui %5 : vector<32x32xi1> to vector<32x32xi32>
    %7 = arith.sitofp %6 : vector<32x32xi32> to vector<32x32xf32>
    %8 = vector.shape_cast %2 : vector<8x32xf32> to vector<8x32x1xf32>
    %9 = vector.shape_cast %7 : vector<32x32xf32> to vector<1x32x32xf32>
    %10 = vector.broadcast %8 : vector<8x32x1xf32> to vector<8x32x32xf32>
    %11 = vector.broadcast %9 : vector<1x32x32xf32> to vector<8x32x32xf32>
    %12 = arith.mulf %10, %11 : vector<8x32x32xf32>
    "tpu.trace_start"() <{level = 10 : i32, message = "bij,bjk->bik"}> : () -> ()
    %cst = arith.constant dense<0.000000e+00> : vector<8x32x32xf32>
    %13 = tpu.matmul %0, %1, %cst {dimension_numbers = #tpu.dot_dimension_numbers<[2], [1], [1], [2], [0, 0, 0, 1, 1, 2], [0], [0]>} : vector<8x32x32xf32>, vector<8x32x32xf32>, vector<8x32x32xf32> -> vector<8x32x32xf32>
    "tpu.trace_stop"() : () -> ()
    %14 = arith.subf %13, %12 : vector<8x32x32xf32>
    %15 = arith.mulf %14, %14 : vector<8x32x32xf32>
    %16 = vector.shape_cast %15 : vector<8x32x32xf32> to vector<1x8x32x32xf32>
    %cst_7 = arith.constant dense<0.000000e+00> : vector<1xf32>
    %17 = vector.multi_reduction <add>, %16, %cst_7 [1, 2, 3] : vector<1x8x32x32xf32> to vector<1xf32>
    %18 = vector.shape_cast %17 : vector<1xf32> to vector<1x1x1x1xf32>
    %19 = vector.extract %18[0, 0, 0, 0] : f32 from vector<1x1x1x1xf32>
    "tpu.trace_start"() <{level = 10 : i32, message = "bij,bkj->bik"}> : () -> ()
    %cst_8 = arith.constant dense<0.000000e+00> : vector<8x32x32xf32>
    %20 = tpu.matmul %0, %0, %cst_8 {dimension_numbers = #tpu.dot_dimension_numbers<[2], [2], [1], [1], [0, 0, 0, 1, 1, 1], [0], [0]>} : vector<8x32x32xf32>, vector<8x32x32xf32>, vector<8x32x32xf32> -> vector<8x32x32xf32>
    "tpu.trace_stop"() : () -> ()
    %21 = arith.subf %20, %12 : vector<8x32x32xf32>
    %22 = arith.mulf %21, %21 : vector<8x32x32xf32>
    %23 = vector.shape_cast %22 : vector<8x32x32xf32> to vector<1x8x32x32xf32>
    %cst_9 = arith.constant dense<0.000000e+00> : vector<1xf32>
    %24 = vector.multi_reduction <add>, %23, %cst_9 [1, 2, 3] : vector<1x8x32x32xf32> to vector<1xf32>
    %25 = vector.shape_cast %24 : vector<1xf32> to vector<1x1x1x1xf32>
    %26 = vector.extract %25[0, 0, 0, 0] : f32 from vector<1x1x1x1xf32>
    %27 = tpu.iota {dimensions = array<i32: 1>} : vector<8x128xi32>
    %c0_i32 = arith.constant 0 : i32
    %28 = vector.broadcast %c0_i32 : i32 to vector<8x128xi32>
    %29 = arith.cmpi eq, %27, %28 : vector<8x128xi32>
    %c1_i32 = arith.constant 1 : i32
    %30 = vector.broadcast %c1_i32 : i32 to vector<8x128xi32>
    %31 = arith.cmpi eq, %27, %30 : vector<8x128xi32>
    %cst_10 = arith.constant 0.000000e+00 : f32
    %32 = vector.broadcast %26 : f32 to vector<8x128xf32>
    %33 = vector.broadcast %cst_10 : f32 to vector<8x128xf32>
    %34 = arith.select %31, %32, %33 : vector<8x128xi1>, vector<8x128xf32>
    %35 = vector.broadcast %19 : f32 to vector<8x128xf32>
    %36 = arith.select %29, %35, %34 : vector<8x128xi1>, vector<8x128xf32>
    %c0_11 = arith.constant 0 : index
    %c0_12 = arith.constant 0 : index
    %c0_13 = arith.constant 0 : index
    %37 = vector.load %arg4[%c0_11, %c0_12, %c0_13] : memref<1x8x128xf32, #tpu.memory_space<vmem>>, vector<1x8x128xf32>
    %38 = vector.shape_cast %37 : vector<1x8x128xf32> to vector<8x128xf32>
    %39 = vector.shape_cast %36 : vector<8x128xf32> to vector<1x8x128xf32>
    tpu.vector_store %arg4[%c0_11, %c0_12, %c0_13], %39 {strides = array<i32>} : memref<1x8x128xf32, #tpu.memory_space<vmem>>, vector<1x8x128xf32>,
    return
  }
  func.func @transform_0(%arg0: i32) -> (i32, i32, i32) {
    %c0_i32 = arith.constant 0 : i32
    %c0_i32_0 = arith.constant 0 : i32
    %c0_i32_1 = arith.constant 0 : i32
    return %arg0, %c0_i32, %c0_i32_0 : i32, i32, i32
  }
  func.func @transform_1(%arg0: i32) -> (i32, i32, i32) {
    %c0_i32 = arith.constant 0 : i32
    %c0_i32_0 = arith.constant 0 : i32
    %c0_i32_1 = arith.constant 0 : i32
    return %arg0, %c0_i32, %c0_i32_0 : i32, i32, i32
  }
  func.func @transform_2(%arg0: i32) -> (i32, i32) {
    %c0_i32 = arith.constant 0 : i32
    %c0_i32_0 = arith.constant 0 : i32
    return %arg0, %c0_i32 : i32, i32
  }
  func.func @transform_3(%arg0: i32) -> (i32, i32, i32) {
    %c0_i32 = arith.constant 0 : i32
    %c0_i32_0 = arith.constant 0 : i32
    %c0_i32_1 = arith.constant 0 : i32
    return %arg0, %c0_i32, %c0_i32_0 : i32, i32, i32
  }
}

</mosaic_0001>

<bundles_post_ra>
// kernel: tpu_custom_call.1
= control target key start
LH: loop header
LB: loop body
LE: loop exit
PB: predicated region body
PF: predicated region fallthrough
CT: control target
= control target key end

     0   :  { %8 = vsyncpa [#allocation3], 0  ;;  %s3535_s0 = inlined_call_operand.hbm [shape: f32[8,32,32], index: 0, kind: input, shape index: {}]   ;;  %s3536_s1 = inlined_call_operand.hbm [shape: f32[8,32,32], index: 1, kind: input, shape index: {}]   ;;  %s3537_s2 = inlined_call_operand.hbm [shape: f32[8,32], index: 2, kind: input, shape index: {}]   ;;  %s3538_s3 = inlined_call_operand.hbm [shape: f32[1,8,128], index: 3, kind: output, shape index: {}]  }
   0x1   :  { %9 = vsyncpa [#allocation6], 0 }
   0x2   :  { %10 = vsyncpa [#allocation4], 0  ;;  %s2791_s12 = smov [#allocation5]   ;;  %s2792_s14 = smov [#allocation2]  }
   0x3   :  { %s28_s13 = sshll.u32 %s2791_s12, 4  ;;  %s16_s15 = sshll.u32 %s2792_s14, 4  ;;  %s29_s13 = int_to_ptr.vmem [resolvable:$true] %s28_s13  ;;  %s2818_s15 = int_to_ptr.vmem [resolvable:$true] %s16_s15 }
   0x4   :  { %s2697_s18 = scalar_lea.hbm %s3536_s1, 4096 }
   0x5   :  { %p2698_p0 = scmp.ne.s32.totalorder %s3536_s1, %s2697_s18  ;;  %p2701_p1 = scmp.lt.u32.totalorder %s2697_s18, %s3536_s1 }
   0x7   :  { %p2703_p2 = pnand %p2701_p1, %p2698_p0 }
   0x9   :  { %2706 = shalt.err (!%p2703_p2)
}
   0xa   :  { %s2707_s23 = scalar_lea.vmem %s29_s13, 4096  ;;  %p2712_p4 = scmp.lt.s32.totalorder %s29_s13, %s29_s13 }
   0xb   :  { %p2708_p3 = scmp.ne.s32.totalorder %s29_s13, %s2707_s23  ;;  %p2713_p5 = scmp.lt.s32.totalorder %s2707_s23, %s2707_s23 }
   0xd   :  { %p2714_p6 = por %p2713_p5, %p2712_p4 }
   0xf   :  { %p2715_p7 = pnand %p2714_p6, %p2708_p3 }
  0x11   :  { %2718 = shalt.err (!%p2715_p7)
}
  0x12   :  { %s2793_s24 = smov 128   ;;  %s2794_s25 = smov 8  }
  0x13   :  { %34 = dma.hbm_to_vmem [thread:$0]  %s3536_s1, 4096, %s29_s13, [#allocation6], %s2793_s24, %s2793_s24, %s2794_s25  }
  0x14   :  { %s2719_s30 = scalar_lea.hbm %s3535_s0, 4096 }
  0x15   :  { %p2720_p8 = scmp.ne.s32.totalorder %s3535_s0, %s2719_s30  ;;  %p2723_p9 = scmp.lt.u32.totalorder %s2719_s30, %s3535_s0 }
  0x17   :  { %p2725_p10 = pnand %p2723_p9, %p2720_p8 }
  0x19   :  { %2728 = shalt.err (!%p2725_p10)
}
  0x1a   :  { %s2729_s8 = scalar_lea.vmem %s2818_s15, 4096  ;;  %p2734_p12 = scmp.lt.s32.totalorder %s2818_s15, %s2818_s15 }
  0x1b   :  { %p2730_p11 = scmp.ne.s32.totalorder %s2818_s15, %s2729_s8  ;;  %p2735_p13 = scmp.lt.s32.totalorder %s2729_s8, %s2729_s8 }
  0x1d   :  { %p2736_p0 = por %p2735_p13, %p2734_p12 }
  0x1f   :  { %p2737_p1 = pnand %p2736_p0, %p2730_p11 }
  0x21   :  { %2740 = shalt.err (!%p2737_p1)
}
  0x22   :  { %22 = dma.hbm_to_vmem [thread:$0]  %s3535_s0, 4096, %s2818_s15, [#allocation3], %s2793_s24, %s2793_s24, %s2794_s25  }
  0x23   :  { %s2795_s10 = smov [#allocation7]   ;;  %s2741_s14 = scalar_lea.hbm %s3537_s2, 128 }
  0x24   :  { %s41_s11 = sshll.u32 %s2795_s10, 4  ;;  %p2742_p2 = scmp.ne.s32.totalorder %s3537_s2, %s2741_s14  ;;  %s42_s11 = int_to_ptr.vmem [resolvable:$true] %s41_s11 }
  0x25   :  { %p2745_p3 = scmp.lt.u32.totalorder %s2741_s14, %s3537_s2 }
  0x27   :  { %p2747_p4 = pnand %p2745_p3, %p2742_p2 }
  0x29   :  { %2750 = shalt.err (!%p2747_p4)
}
  0x2a   :  { %s2751_s20 = scalar_lea.vmem %s42_s11, 128  ;;  %p2756_p6 = scmp.lt.s32.totalorder %s42_s11, %s42_s11 }
  0x2b   :  { %p2752_p5 = scmp.ne.s32.totalorder %s42_s11, %s2751_s20  ;;  %p2757_p7 = scmp.lt.s32.totalorder %s2751_s20, %s2751_s20 }
  0x2d   :  { %p2758_p8 = por %p2757_p7, %p2756_p6 }
  0x2f   :  { %p2759_p9 = pnand %p2758_p8, %p2752_p5 }
  0x31   :  { %2762 = shalt.err (!%p2759_p9)
}
  0x32   :  { %44 = dma.hbm_to_vmem [thread:$0]  %s3537_s2, 128, %s42_s11, [#allocation6]  }
  0x33   :  { %2785 = dma.done.wait [#allocation3], 4096  }
  0x34   :  { %2786 = vsyncadd [#allocation3], 4294963200 }
  0x35   :  { %2787 = dma.done.wait [#allocation6], 4224  }
  0x36   :  { %2788 = vsyncadd [#allocation6], 4294963072  ;;  %vm322_vm0 = vcmask 261120   ;;  %v86_v0 = vld [vmem:[#allocation5] sm:$0xff]  ;;  %v87_v1 = vld [vmem:[#allocation5 + $0x8] sm:$0xff]  ;;  %v119_v40 = vlaneseq  ;;  %s2797_s21 = smov [#allocation8]  }
  0x37   :  { %v88_v2 = vld [vmem:[#allocation5 + $0x10] sm:$0xff]  ;;  %v2526_v3 = vpack.c.bf16 %v87_v1, %v86_v0  ;;  %v89_v4 = vld [vmem:[#allocation5 + $0x18] sm:$0xff]  ;;  %v2861_v5 = vld [vmem:[#allocation2] sm:$0xff]  ;;  %s2064_s22 = sshll.u32 %s2797_s21, 4  ;;  %s2065_s22 = int_to_ptr.vmem [resolvable:$true] %s2064_s22 }
  0x38   :  { %v90_v6 = vld [vmem:[#allocation5 + $0x20] sm:$0xff]  ;;  %v2530_v7 = vpack.c.bf16 %v89_v4, %v88_v2  ;;  %2310 = vmatprep.mubr.msk.f32.mxu0 %vm322_vm0, %v2861_v5  ;;  %v91_v8 = vld [vmem:[#allocation5 + $0x28] sm:$0xff]  ;;  %v92_v12 = vld [vmem:[#allocation5 + $0x30] sm:$0xff]  ;;  %v2908_v51 = vshrl.u32 %v119_v40, 7  ;;  %s2763_s24 = scalar_lea.vmem %s2065_s22, 128  ;;  %p2768_p11 = scmp.lt.s32.totalorder %s2065_s22, %s2065_s22 }
  0x39   :  { %v94_v9 = vld [vmem:[#allocation5 + $0x40] sm:$0xff]  ;;  %2527 = vmatprep.subr.bf16.mxu0 %v2526_v3  ;;  %v2534_v10 = vpack.c.bf16 %v91_v8, %v90_v6  ;;  %v95_v11 = vld [vmem:[#allocation5 + $0x48] sm:$0xff]  ;;  %v93_v13 = vld [vmem:[#allocation5 + $0x38] sm:$0xff]  ;;  %p2764_p10 = scmp.ne.s32.totalorder %s2065_s22, %s2763_s24  ;;  %p2769_p12 = scmp.lt.s32.totalorder %s2763_s24, %s2763_s24 }
  0x3a   :  { %2529 = vmatpush3.bf16.msra.mxu0 %v2526_v3  ;;  %v2542_v14 = vpack.c.bf16 %v95_v11, %v94_v9  ;;  %v2538_v15 = vpack.c.bf16 %v93_v13, %v92_v12  ;;  %v96_v16 = vld [vmem:[#allocation5 + $0x50] sm:$0xff]  ;;  %v2865_v17 = vld [vmem:[#allocation2 + $0x20] sm:$0xff]  ;;  %v97_v18 = vld [vmem:[#allocation5 + $0x58] sm:$0xff]  ;;  %v273_v57 = vsub.s32 7, %v2908_v51  ;;  %v140_v13 = vsub.s32 0, %v2908_v51 }
  0x3b   :  { %2531 = vmatprep.subr.bf16.mxu0 %v2530_v7  ;;  %2535 = vmatprep.subr.bf16.mxu1 %v2534_v10  ;;  %v98_v19 = vld [vmem:[#allocation5 + $0x60] sm:$0xff]  ;;  %v99_v20 = vld [vmem:[#allocation5 + $0x68] sm:$0xff]  ;;  %v100_v23 = vld [vmem:[#allocation5 + $0x70] sm:$0xff]  ;;  %v2546_v25 = vpack.c.bf16 %v97_v18, %v96_v16  ;;  %p2770_p13 = por %p2769_p12, %p2768_p11 }
  0x3c   :  { %2537 = vmatpush3.bf16.msra.mxu1 %v2534_v10  ;;  %2324 = vmatprep.mubr.msk.f32.mxu1 %vm322_vm0, %v2865_v17  ;;  %v2550_v21 = vpack.c.bf16 %v99_v20, %v98_v19  ;;  %v2869_v22 = vld [vmem:[#allocation2 + $0x8] sm:$0xff]  ;;  %v2871_v24 = vld [vmem:[#allocation2 + $0x10] sm:$0xff]  ;;  %v101_v26 = vld [vmem:[#allocation5 + $0x78] sm:$0xff] }
  0x3d   :  { %2539 = vmatprep.subr.bf16.mxu1 %v2538_v15  ;;  %v2873_v27 = vld [vmem:[#allocation2 + $0x28] sm:$0xff]  ;;  %v102_v28 = vld [vmem:[#allocation5 + $0x80] sm:$0xff]  ;;  %v2877_v30 = vld [vmem:[#allocation2 + $0x30] sm:$0xff]  ;;  %v2554_v31 = vpack.c.bf16 %v101_v26, %v100_v23  ;;  %p2771_p0 = pnand %p2770_p13, %p2764_p10 }
  0x3e   :  { %2533 = vmatpush3.bf16.msra.mxu0 %v2530_v7  ;;  %v103_v29 = vld [vmem:[#allocation5 + $0x88] sm:$0xff]  ;;  %v2881_v32 = vld [vmem:[#allocation2 + $0x18] sm:$0xff]  ;;  %v106_v33 = vld [vmem:[#allocation5 + $0xa0] sm:$0xff]  ;;  %v2602_v19 = vpack.c.bf16 %v2873_v27, %v2865_v17 }
  0x3f   :  { %2543 = vmatprep.subr.bf16.mxu0 %v2542_v14  ;;  %v107_v34 = vld [vmem:[#allocation5 + $0xa8] sm:$0xff]  ;;  %v2883_v35 = vld [vmem:[#allocation2 + $0x40] sm:$0xff]  ;;  %v2558_v36 = vpack.c.bf16 %v103_v29, %v102_v28  ;;  %v2889_v37 = vld [vmem:[#allocation2 + $0x38] sm:$0xff] }
  0x40   :  { %2541 = vmatpush3.bf16.msra.mxu1 %v2538_v15  ;;  %v104_v38 = vld [vmem:[#allocation5 + $0x90] sm:$0xff]  ;;  %v105_v39 = vld [vmem:[#allocation5 + $0x98] sm:$0xff]  ;;  %v2893_v41 = vld [vmem:[#allocation2 + $0x60] sm:$0xff]  ;;  %v2566_v42 = vpack.c.bf16 %v107_v34, %v106_v33  ;;  %v2596_v33 = vpack.c.bf16 %v2881_v32, %v2871_v24 }
  0x41   :  { %2311 = vmatmul.mubr.msk.f32.vlgmr.msra.gmra.mrb[0].mxu0 %vm322_vm0, %v2869_v22  ;;  %2551 = vmatprep.subr.bf16.mxu1 %v2550_v21  ;;  %v2895_v43 = vld [vmem:[#allocation2 + $0x48] sm:$0xff]  ;;  %v108_v44 = vld [vmem:[#allocation5 + $0xb0] sm:$0xff]  ;;  %v109_v45 = vld [vmem:[#allocation5 + $0xb8] sm:$0xff]  ;;  %v2562_v47 = vpack.c.bf16 %v105_v39, %v104_v38 }
  0x42   :  { %2545 = vmatpush3.bf16.msra.mxu0 %v2542_v14  ;;  %2313 = vmatprep.mubr.msk.f32.mxu0 %vm322_vm0, %v2871_v24  ;;  %v2899_v46 = vld [vmem:[#allocation2 + $0x50] sm:$0xff]  ;;  %v2903_v48 = vld [vmem:[#allocation2 + $0x68] sm:$0xff]  ;;  %v110_v49 = vld [vmem:[#allocation5 + $0xc0] sm:$0xff]  ;;  %v2570_v53 = vpack.c.bf16 %v109_v45, %v108_v44  ;;  %v2590_v14 = vpack.c.bf16 %v2869_v22, %v2861_v5  ;;  %v2614_v39 = vpack.c.bf16 %v2895_v43, %v2883_v35  ;;  %v197_v45 = vsub.s32 3, %v2908_v51 }
  0x43   :  { %2547 = vmatprep.subr.bf16.mxu0 %v2546_v25  ;;  %2325 = vmatmul.mubr.msk.f32.vlgmr.msra.gmra.mrb[0].mxu1 %vm322_vm0, %v2873_v27  ;;  %v111_v50 = vld [vmem:[#allocation5 + $0xc8] sm:$0xff]  ;;  %v2912_v52 = vld [vmem:[#allocation2 + $0x70] sm:$0xff]  ;;  %v2916_v54 = vld [vmem:[#allocation2 + $0x58] sm:$0xff] }
  0x44   :  { %2553 = vmatpush3.bf16.msra.mxu1 %v2550_v21  ;;  %2327 = vmatprep.mubr.msk.f32.mxu1 %vm322_vm0, %v2877_v30  ;;  %v114_v55 = vld [vmem:[#allocation5 + $0xe0] sm:$0xff]  ;;  %v115_v56 = vld [vmem:[#allocation5 + $0xe8] sm:$0xff]  ;;  %v2574_v59 = vpack.c.bf16 %v111_v50, %v110_v49  ;;  %v2925_v60 = vld [vmem:[#allocation2 + $0x78] sm:$0xff]  ;;  %v2620_v44 = vpack.c.bf16 %v2916_v54, %v2899_v46  ;;  %v254_v50 = vsub.s32 6, %v2908_v51 }
  0x45   :  { %2314 = vmatmul.mubr.msk.f32.gmra.mrb[2].mxu0 %vm322_vm0, %v2881_v32  ;;  %2555 = vmatprep.subr.bf16.mxu1 %v2554_v31  ;;  %v2919_v58 = vld [vmem:[#allocation2 + $0x80] sm:$0xff]  ;;  %v112_v61 = vld [vmem:[#allocation5 + $0xd0] sm:$0xff]  ;;  %v113_v62 = vld [vmem:[#allocation5 + $0xd8] sm:$0xff]  ;;  %v2582_v0 = vpack.c.bf16 %v115_v56, %v114_v55 }
  0x46   :  { %2549 = vmatpush3.bf16.msra.mxu0 %v2546_v25  ;;  %2338 = vmatprep.mubr.msk.f32.mxu0 %vm322_vm0, %v2883_v35  ;;  %v2929_v63 = vld [vmem:[#allocation2 + $0xa0] sm:$0xff]  ;;  %v2933_v2 = vld [vmem:[#allocation2 + $0x88] sm:$0xff]  ;;  %v116_v3 = vld [vmem:[#allocation5 + $0xf0] sm:$0xff]  ;;  %v2578_v7 = vpack.c.bf16 %v113_v62, %v112_v61 }
  0x47   :  { %2559 = vmatprep.subr.bf16.mxu0 %v2558_v36  ;;  %2328 = vmatmul.mubr.msk.f32.gmra.mrb[2].mxu1 %vm322_vm0, %v2889_v37  ;;  %v2931_v1 = vld [vmem:[#allocation7] sm:$0xff]  ;;  %v117_v4 = vld [vmem:[#allocation5 + $0xf8] sm:$0xff]  ;;  %v2942_v8 = vld [vmem:[#allocation2 + $0x90] sm:$0xff] }
  0x48   :  { %2557 = vmatpush3.bf16.msra.mxu1 %v2554_v31  ;;  %2352 = vmatprep.mubr.msk.f32.mxu1 %vm322_vm0, %v2893_v41  ;;  %v2938_v6 = vrot.slane %v2931_v1, %v273_v57  ;;  %v2944_v9 = vld [vmem:[#allocation2 + $0xa8] sm:$0xff]  ;;  %v2586_v10 = vpack.c.bf16 %v117_v4, %v116_v3  ;;  %v2950_v11 = vld [vmem:[#allocation2 + $0xb0] sm:$0xff]  ;;  %v2954_v12 = vld [vmem:[#allocation2 + $0x98] sm:$0xff]  ;;  %v141_v23 = vrot.slane %v2931_v1, %v140_v13  ;;  %v159_v31 = vsub.s32 1, %v2908_v51 }
  0x49   :  { %2339 = vmatmul.mubr.msk.f32.vlgmr.msra.gmra.mrb[4].mxu0 %vm322_vm0, %v2895_v43  ;;  %2567 = vmatprep.subr.bf16.mxu1 %v2566_v42  ;;  %v2961_v15 = vld [vmem:[#allocation2 + $0xc0] sm:$0xff]  ;;  %vm2965_vm1 = vmpackc.low %vm322_vm0, %vm322_vm0  ;;  %v2971_v18 = vld [vmem:[#allocation2 + $0xb8] sm:$0xff]  ;;  %v198_v49 = vrot.slane %v2931_v1, %v197_v45 }
  0x4a   :  { %2561 = vmatpush3.bf16.msra.mxu0 %v2558_v36  ;;  %2341 = vmatprep.mubr.msk.f32.mxu0 %vm322_vm0, %v2899_v46  ;;  %v2977_v20 = vld [vmem:[#allocation2 + $0xe0] sm:$0xff]  ;;  %v2979_v21 = vld [vmem:[#allocation2 + $0xc8] sm:$0xff]  ;;  %v2988_v25 = vld [vmem:[#allocation2 + $0xd0] sm:$0xff]  ;;  %v2608_v36 = vpack.c.bf16 %v2889_v37, %v2877_v30  ;;  %v160_v38 = vrot.slane %v2931_v1, %v159_v31 }
  0x4b   :  { %2563 = vmatprep.subr.bf16.mxu0 %v2562_v47  ;;  %2353 = vmatmul.mubr.msk.f32.vlgmr.msra.gmra.mrb[4].mxu1 %vm322_vm0, %v2903_v48  ;;  %v2990_v26 = vld [vmem:[#allocation2 + $0xe8] sm:$0xff]  ;;  %v2998_v28 = vld [vmem:[#allocation2 + $0xf0] sm:$0xff]  ;;  %v3002_v29 = vld [vmem:[#allocation2 + $0xd8] sm:$0xff] }
  0x4c   :  { %2569 = vmatpush3.bf16.msra.mxu1 %v2566_v42  ;;  %2355 = vmatprep.mubr.msk.f32.mxu1 %vm322_vm0, %v2912_v52  ;;  %v3011_v34 = vld [vmem:[#allocation2 + $0xf8] sm:$0xff]  ;;  %v2626_v42 = vpack.c.bf16 %v2903_v48, %v2893_v41 }
  0x4d   :  { %2342 = vmatmul.mubr.msk.f32.gmra.mrb[6].mxu0 %vm322_vm0, %v2916_v54  ;;  %2571 = vmatprep.subr.bf16.mxu1 %v2570_v53 }
  0x4e   :  { %2565 = vmatpush3.bf16.msra.mxu0 %v2562_v47  ;;  %2366 = vmatprep.mubr.msk.f32.mxu0 %vm322_vm0, %v2919_v58  ;;  %v2632_v47 = vpack.c.bf16 %v2925_v60, %v2912_v52 }
  0x4f   :  { %2575 = vmatprep.subr.bf16.mxu0 %v2574_v59  ;;  %2356 = vmatmul.mubr.msk.f32.gmra.mrb[6].mxu1 %vm322_vm0, %v2925_v60 }
  0x50   :  { %2573 = vmatpush3.bf16.msra.mxu1 %v2570_v53  ;;  %2380 = vmatprep.mubr.msk.f32.mxu1 %vm322_vm0, %v2929_v63  ;;  %v255_v53 = vrot.slane %v2931_v1, %v254_v50 }
  0x51   :  { %2367 = vmatmul.mubr.msk.f32.vlgmr.msra.gmra.mrb[8].mxu0 %vm322_vm0, %v2933_v2  ;;  %2583 = vmatprep.subr.bf16.mxu1 %v2582_v0 }
  0x52   :  { %2577 = vmatpush3.bf16.msra.mxu0 %v2574_v59  ;;  %2369 = vmatprep.mubr.msk.f32.mxu0 %vm322_vm0, %v2942_v8 }
  0x53   :  { %2579 = vmatprep.subr.bf16.mxu0 %v2578_v7  ;;  %2381 = vmatmul.mubr.msk.f32.vlgmr.msra.gmra.mrb[8].mxu1 %vm322_vm0, %v2944_v9 }
  0x54   :  { %2585 = vmatpush3.bf16.msra.mxu1 %v2582_v0  ;;  %2383 = vmatprep.mubr.msk.f32.mxu1 %vm322_vm0, %v2950_v11 }
  0x55   :  { %2370 = vmatmul.mubr.msk.f32.gmra.mrb[10].mxu0 %vm322_vm0, %v2954_v12  ;;  %2587 = vmatprep.subr.bf16.mxu1 %v2586_v10 }
  0x56   :  { %2581 = vmatpush3.bf16.msra.mxu0 %v2578_v7  ;;  %2394 = vmatprep.mubr.msk.f32.mxu0 %vm322_vm0, %v2961_v15 }
  0x57   :  { %2592 = vmatprep.subr.msk.bf16.mxu0 %vm2965_vm1, %v2590_v14  ;;  %2384 = vmatmul.mubr.msk.f32.gmra.mrb[10].mxu1 %vm322_vm0, %v2971_v18 }
  0x58   :  { %2589 = vmatpush3.bf16.msra.mxu1 %v2586_v10  ;;  %2408 = vmatprep.mubr.msk.f32.mxu1 %vm322_vm0, %v2977_v20  ;;  %v121_v10 = vadd.s32 8, %v2908_v51 }
  0x59   :  { %2395 = vmatmul.mubr.msk.f32.vlgmr.msra.gmra.mrb[12].mxu0 %vm322_vm0, %v2979_v21  ;;  %2604 = vmatprep.subr.msk.bf16.mxu1 %vm2965_vm1, %v2602_v19 }
  0x5a   :  { %2397 = vmatprep.mubr.msk.f32.mxu0 %vm322_vm0, %v2988_v25  ;;  %151 = vbcast.lane.b32.xlu1 %v141_v23, 272 }
  0x5b   :  { %2409 = vmatmul.mubr.msk.f32.vlgmr.msra.gmra.mrb[12].mxu1 %vm322_vm0, %v2990_v26  ;;  %143 = vbcast.lane.b32.xlu0 %v141_v23, 256 }
  0x5c   :  { %2411 = vmatprep.mubr.msk.f32.mxu1 %vm322_vm0, %v2998_v28 }
  0x5d   :  { %2398 = vmatmul.mubr.msk.f32.gmra.mrb[14].mxu0 %vm322_vm0, %v3002_v29 }
  0x5e   :  { %2422 = vmatprep.mubr.msk.f32.mxu0 %vm322_vm0, %v2861_v5  ;;  %155 = vbcast.lane.b32.xlu1 %v141_v23, 280  ;;  %v178_v5 = vsub.s32 2, %v2908_v51 }
  0x5f   :  { %2595 = vmatpush3.bf16.xpose.msk.msra.mxu0 %vm2965_vm1, %v2590_v14  ;;  %2412 = vmatmul.mubr.msk.f32.gmra.mrb[14].mxu1 %vm322_vm0, %v3011_v34  ;;  %v122_v14 = vadd.s32 16, %v2908_v51 }
  0x60   :  { %2598 = vmatprep.subr.msk.bf16.mxu0 %vm2965_vm1, %v2596_v33  ;;  %2436 = vmatprep.mubr.msk.f32.mxu1 %vm322_vm0, %v2865_v17  ;;  %v179_v17 = vrot.slane %v2931_v1, %v178_v5 }
  0x61   :  { %2607 = vmatpush3.bf16.xpose.msk.msra.mxu1 %vm2965_vm1, %v2602_v19  ;;  %147 = vbcast.lane.b32.xlu0 %v141_v23, 264 }
  0x62   :  { %2610 = vmatprep.subr.msk.bf16.mxu1 %vm2965_vm1, %v2608_v36  ;;  %166 = vbcast.lane.b32.xlu1 %v160_v38, 264 }
  0x65   :  { %162 = vbcast.lane.b32.xlu0 %v160_v38, 256 }
  0x66   :  { %174 = vbcast.lane.b32.xlu1 %v160_v38, 280 }
  0x67   :  { %2601 = vmatpush3.bf16.xpose.msk.msra.mxu0 %vm2965_vm1, %v2596_v33 }
  0x68   :  { %2616 = vmatprep.subr.msk.bf16.mxu0 %vm2965_vm1, %v2614_v39 }
  0x69   :  { %2613 = vmatpush3.bf16.xpose.msk.msra.mxu1 %vm2965_vm1, %v2608_v36  ;;  %170 = vbcast.lane.b32.xlu0 %v160_v38, 272 }
  0x6a   :  { %2628 = vmatprep.subr.msk.bf16.mxu1 %vm2965_vm1, %v2626_v42  ;;  %185 = vbcast.lane.b32.xlu1 %v179_v17, 264 }
  0x6d   :  { %181 = vbcast.lane.b32.xlu0 %v179_v17, 256 }
  0x6e   :  { %2423 = vmatmul.mubr.msk.f32.vlgmr.msra.gmra.mrb[16].mxu0 %vm322_vm0, %v2869_v22  ;;  %193 = vbcast.lane.b32.xlu1 %v179_v17, 280  ;;  %v2638_v22 = vpack.c.bf16 %v2933_v2, %v2919_v58 }
  0x6f   :  { %2619 = vmatpush3.bf16.xpose.msk.msra.mxu0 %vm2965_vm1, %v2614_v39  ;;  %2425 = vmatprep.mubr.msk.f32.mxu0 %vm322_vm0, %v2871_v24  ;;  %v216_v24 = vsub.s32 4, %v2908_v51 }
  0x70   :  { %2437 = vmatmul.mubr.msk.f32.vlgmr.msra.gmra.mrb[16].mxu1 %vm322_vm0, %v2873_v27  ;;  %2622 = vmatprep.subr.msk.bf16.mxu0 %vm2965_vm1, %v2620_v44  ;;  %v2650_v27 = vpack.c.bf16 %v2944_v9, %v2929_v63 }
  0x71   :  { %2631 = vmatpush3.bf16.xpose.msk.msra.mxu1 %vm2965_vm1, %v2626_v42  ;;  %2439 = vmatprep.mubr.msk.f32.mxu1 %vm322_vm0, %v2877_v30  ;;  %v217_v30 = vrot.slane %v2931_v1, %v216_v24 }
  0x72   :  { %2426 = vmatmul.mubr.msk.f32.gmra.mrb[18].mxu0 %vm322_vm0, %v2881_v32  ;;  %2634 = vmatprep.subr.msk.bf16.mxu1 %vm2965_vm1, %v2632_v47  ;;  %v2644_v32 = vpack.c.bf16 %v2954_v12, %v2942_v8 }
  0x73   :  { %2450 = vmatprep.mubr.msk.f32.mxu0 %vm322_vm0, %v2883_v35  ;;  %189 = vbcast.lane.b32.xlu0 %v179_v17, 272  ;;  %v2656_v35 = vpack.c.bf16 %v2971_v18, %v2950_v11 }
  0x74   :  { %2440 = vmatmul.mubr.msk.f32.gmra.mrb[18].mxu1 %vm322_vm0, %v2889_v37  ;;  %204 = vbcast.lane.b32.xlu1 %v198_v49, 264  ;;  %v235_v37 = vsub.s32 5, %v2908_v51 }
  0x75   :  { %2464 = vmatprep.mubr.msk.f32.mxu1 %vm322_vm0, %v2893_v41  ;;  %v2662_v41 = vpack.c.bf16 %v2979_v21, %v2961_v15 }
  0x77   :  { %2625 = vmatpush3.bf16.xpose.msk.msra.mxu0 %vm2965_vm1, %v2620_v44  ;;  %200 = vbcast.lane.b32.xlu0 %v198_v49, 256 }
  0x78   :  { %2640 = vmatprep.subr.msk.bf16.mxu0 %vm2965_vm1, %v2638_v22  ;;  %212 = vbcast.lane.b32.xlu1 %v198_v49, 280 }
  0x79   :  { %2637 = vmatpush3.bf16.xpose.msk.msra.mxu1 %vm2965_vm1, %v2632_v47 }
  0x7a   :  { %2652 = vmatprep.subr.msk.bf16.mxu1 %vm2965_vm1, %v2650_v27 }
  0x7b   :  { %208 = vbcast.lane.b32.xlu0 %v198_v49, 272 }
  0x7c   :  { %223 = vbcast.lane.b32.xlu1 %v217_v30, 264 }
  0x7e   :  { %2451 = vmatmul.mubr.msk.f32.vlgmr.msra.gmra.mrb[20].mxu0 %vm322_vm0, %v2895_v43  ;;  %v236_v43 = vrot.slane %v2931_v1, %v235_v37 }
  0x7f   :  { %2643 = vmatpush3.bf16.xpose.msk.msra.mxu0 %vm2965_vm1, %v2638_v22  ;;  %2453 = vmatprep.mubr.msk.f32.mxu0 %vm322_vm0, %v2899_v46  ;;  %v2674_v46 = vpack.c.bf16 %v2990_v26, %v2977_v20 }
  0x80   :  { %2465 = vmatmul.mubr.msk.f32.vlgmr.msra.gmra.mrb[20].mxu1 %vm322_vm0, %v2903_v48  ;;  %2646 = vmatprep.subr.msk.bf16.mxu0 %vm2965_vm1, %v2644_v32  ;;  %v2668_v48 = vpack.c.bf16 %v3002_v29, %v2988_v25 }
  0x81   :  { %2655 = vmatpush3.bf16.xpose.msk.msra.mxu1 %vm2965_vm1, %v2650_v27  ;;  %2467 = vmatprep.mubr.msk.f32.mxu1 %vm322_vm0, %v2912_v52  ;;  %v2680_v52 = vpack.c.bf16 %v3011_v34, %v2998_v28 }
  0x82   :  { %2454 = vmatmul.mubr.msk.f32.gmra.mrb[22].mxu0 %vm322_vm0, %v2916_v54  ;;  %2658 = vmatprep.subr.msk.bf16.mxu1 %vm2965_vm1, %v2656_v35 }
  0x83   :  { %2478 = vmatprep.mubr.msk.f32.mxu0 %vm322_vm0, %v2919_v58  ;;  %219 = vbcast.lane.b32.xlu0 %v217_v30, 256 }
  0x84   :  { %2468 = vmatmul.mubr.msk.f32.gmra.mrb[22].mxu1 %vm322_vm0, %v2925_v60  ;;  %231 = vbcast.lane.b32.xlu1 %v217_v30, 280 }
  0x85   :  { %2492 = vmatprep.mubr.msk.f32.mxu1 %vm322_vm0, %v2929_v63 }
  0x87   :  { %2649 = vmatpush3.bf16.xpose.msk.msra.mxu0 %vm2965_vm1, %v2644_v32  ;;  %227 = vbcast.lane.b32.xlu0 %v217_v30, 272 }
  0x88   :  { %2664 = vmatprep.subr.msk.bf16.mxu0 %vm2965_vm1, %v2662_v41  ;;  %242 = vbcast.lane.b32.xlu1 %v236_v43, 264 }
  0x89   :  { %2661 = vmatpush3.bf16.xpose.msk.msra.mxu1 %vm2965_vm1, %v2656_v35 }
  0x8a   :  { %2676 = vmatprep.subr.msk.bf16.mxu1 %vm2965_vm1, %v2674_v46 }
  0x8b   :  { %238 = vbcast.lane.b32.xlu0 %v236_v43, 256 }
  0x8c   :  { %250 = vbcast.lane.b32.xlu1 %v236_v43, 280 }
  0x8e   :  { %2479 = vmatmul.mubr.msk.f32.vlgmr.msra.gmra.mrb[24].mxu0 %vm322_vm0, %v2933_v2 }
  0x8f   :  { %2667 = vmatpush3.bf16.xpose.msk.msra.mxu0 %vm2965_vm1, %v2662_v41  ;;  %2481 = vmatprep.mubr.msk.f32.mxu0 %vm322_vm0, %v2942_v8 }
  0x90   :  { %2493 = vmatmul.mubr.msk.f32.vlgmr.msra.gmra.mrb[24].mxu1 %vm322_vm0, %v2944_v9  ;;  %2670 = vmatprep.subr.msk.bf16.mxu0 %vm2965_vm1, %v2668_v48  ;;  %v3195_v9 = vand.u32 127, %v119_v40 }
  0x91   :  { %2679 = vmatpush3.bf16.xpose.msk.msra.mxu1 %vm2965_vm1, %v2674_v46  ;;  %2495 = vmatprep.mubr.msk.f32.mxu1 %vm322_vm0, %v2950_v11 }
  0x92   :  { %2482 = vmatmul.mubr.msk.f32.gmra.mrb[26].mxu0 %vm322_vm0, %v2954_v12  ;;  %2682 = vmatprep.subr.msk.bf16.mxu1 %vm2965_vm1, %v2680_v52  ;;  %3543 = vst [vmem:[#allocation12_spill] sm:$0xff] %v3195_v9  ;;  %v123_v12 = vadd.s32 24, %v2908_v51  ;;  %vm127_vm2 = vcmp.eq.s32.totalorder %v121_v10, %v3195_v9  ;;  %vm126_vm3 = vcmp.eq.s32.totalorder %v2908_v51, %v3195_v9 }
  0x93   :  { %2506 = vmatprep.mubr.msk.f32.mxu0 %vm322_vm0, %v2961_v15  ;;  %246 = vbcast.lane.b32.xlu0 %v236_v43, 272  ;;  %v2796_v15 = vmov 0.0   ;;  %vm128_vm5 = vcmp.eq.s32.totalorder %v122_v14, %v3195_v9 }
  0x94   :  { %2496 = vmatmul.mubr.msk.f32.gmra.mrb[26].mxu1 %vm322_vm0, %v2971_v18  ;;  %261 = vbcast.lane.b32.xlu1 %v255_v53, 264  ;;  %v3207_v16 = vsel %vm127_vm2, 1.0, %v2796_v15  ;;  %v3209_v40 = vsel %vm126_vm3, 1.0, %v2796_v15  ;;  %vm129_vm4 = vcmp.eq.s32.totalorder %v123_v12, %v3195_v9  ;;  %v3225_v23 = vsel %vm128_vm5, 1.0, %v2796_v15 }
  0x95   :  { %2520 = vmatprep.mubr.msk.f32.mxu1 %vm322_vm0, %v2977_v20  ;;  %v3223_v51 = vsel %vm129_vm4, 1.0, %v2796_v15 }
  0x97   :  { %2673 = vmatpush3.bf16.xpose.msk.msra.mxu0 %vm2965_vm1, %v2668_v48  ;;  %257 = vbcast.lane.b32.xlu0 %v255_v53, 256 }
  0x98   :  { %269 = vbcast.lane.b32.xlu1 %v255_v53, 280 }
  0x99   :  { %2685 = vmatpush3.bf16.xpose.msk.msra.mxu1 %vm2965_vm1, %v2680_v52 }
  0x9b   :  { %265 = vbcast.lane.b32.xlu0 %v255_v53, 272 }
  0x9c   :  { %280 = vbcast.lane.b32.xlu1 %v2938_v6, 264 }
  0x9e   :  { %2507 = vmatmul.mubr.msk.f32.vlgmr.msra.gmra.mrb[28].mxu0 %vm322_vm0, %v2979_v21 }
  0x9f   :  { %2509 = vmatprep.mubr.msk.f32.mxu0 %vm322_vm0, %v2988_v25  ;;  %276 = vbcast.lane.b32.xlu0 %v2938_v6, 256 }
  0xa0   :  { %2521 = vmatmul.mubr.msk.f32.vlgmr.msra.gmra.mrb[28].mxu1 %vm322_vm0, %v2990_v26  ;;  %288 = vbcast.lane.b32.xlu1 %v2938_v6, 280 }
  0xa1   :  { %2523 = vmatprep.mubr.msk.f32.mxu1 %vm322_vm0, %v2998_v28 }
  0xa2   :  { %2510 = vmatmul.mubr.msk.f32.gmra.mrb[30].mxu0 %vm322_vm0, %v3002_v29 }
  0xa3   :  { %284 = vbcast.lane.b32.xlu0 %v2938_v6, 272 }
  0xa4   :  { %2524 = vmatmul.mubr.msk.f32.gmra.mrb[30].mxu1 %vm322_vm0, %v3011_v34 }
  0xcc   :  { %v152_v54 = vpop.permute.xlu1 %151 }
  0xcd   :  { %v144_v55 = vpop.permute.xlu0 %143  ;;  %v3238_v34 = vmul.f32 %v3225_v23, %v152_v54 }
  0xce   :  { %v3221_v21 = vmul.f32 %v3209_v40, %v144_v55 }
  0xd0   :  { %v156_v56 = vpop.permute.xlu1 %155 }
  0xd1   :  { %v3234_v29 = vmul.f32 %v3223_v51, %v156_v56 }
  0xd3   :  { %v148_v57 = vpop.permute.xlu0 %147 }
  0xd4   :  { %v167_v58 = vpop.permute.xlu1 %166  ;;  %v3216_v19 = vmul.f32 %v3207_v16, %v148_v57 }
  0xd5   :  { %v3228_v25 = vmul.f32 %v3207_v16, %v167_v58 }
  0xd7   :  { %v163_v59 = vpop.permute.xlu0 %162 }
  0xd8   :  { %v175_v60 = vpop.permute.xlu1 %174  ;;  %v3231_v26 = vmul.f32 %v3209_v40, %v163_v59 }
  0xd9   :  { %v3244_v39 = vmul.f32 %v3223_v51, %v175_v60 }
  0xdb   :  { %v171_v61 = vpop.permute.xlu0 %170 }
  0xdc   :  { %v186_v62 = vpop.permute.xlu1 %185  ;;  %v3250_v47 = vmul.f32 %v3225_v23, %v171_v61 }
  0xdd   :  { %v3254_v27 = vmul.f32 %v3207_v16, %v186_v62 }
  0xdf   :  { %v182_v63 = vpop.permute.xlu0 %181 }
  0xe0   :  { %v3182_v0 = vpop.permute.xlu1 %193  ;;  %v3259_v37 = vmul.f32 %v3209_v40, %v182_v63 }
  0xe1   :  { %v3273_v61 = vmul.f32 %v3223_v51, %v3182_v0 }
  0xe5   :  { %v3184_v1 = vpop.permute.xlu0 %189 }
  0xe6   :  { %v205_v2 = vpop.permute.xlu1 %204 }
  0xe7   :  { %v3264_v50 = vmul.f32 %v3207_v16, %v205_v2 }
  0xe9   :  { %v201_v3 = vpop.permute.xlu0 %200 }
  0xea   :  { %v3186_v4 = vpop.permute.xlu1 %212  ;;  %v3267_v52 = vmul.f32 %v3209_v40, %v201_v3  ;;  %v3278_v3 = vmul.f32 %v3225_v23, %v3184_v1 }
  0xeb   :  { %v3283_v12 = vmul.f32 %v3223_v51, %v3186_v4 }
  0xed   :  { %v3188_v6 = vpop.permute.xlu0 %208 }
  0xee   :  { %v3190_v7 = vpop.permute.xlu1 %223  ;;  %v3288_v0 = vmul.f32 %v3225_v23, %v3188_v6 }
  0xf5   :  { %v3192_v8 = vpop.permute.xlu0 %219 }
  0xf6   :  { %v3198_v11 = vpop.permute.xlu1 %231 }
  0xf9   :  { %v3202_v13 = vpop.permute.xlu0 %227 }
  0xfa   :  { %v3213_v18 = vpop.permute.xlu1 %242 }
  0xfd   :  { %v3218_v20 = vpop.permute.xlu0 %238 }
  0xfe   :  { %v3241_v5 = vpop.permute.xlu1 %250 }
 0x105   :  { %v3247_v45 = vpop.permute.xlu0 %246 }
 0x106   :  { %v262_v60 = vpop.permute.xlu1 %261 }
 0x109   :  { %v258_v2 = vpop.permute.xlu0 %257 }
 0x114   :  { %v2312_v28 = vpop.f32.mrb[0].mxu0 }
 0x115   :  { %v1100_v31 = vsub.f32 %v2312_v28, %v3216_v19  ;;  %v401_v33 = vpop.f32.mrb[1].mxu0 }
 0x116   :  { %v1099_v36 = vsub.f32 %v401_v33, %v3221_v21  ;;  %v2326_v38 = vpop.f32.mrb[0].mxu1 }
 0x117   :  { %v1132_v42 = vmul.f32 %v1100_v31, %v1100_v31  ;;  %v1104_v17 = vsub.f32 %v2326_v38, %v3228_v25  ;;  %v498_v44 = vpop.f32.mrb[1].mxu1 }
 0x118   :  { %v1131_v49 = vmul.f32 %v1099_v36, %v1099_v36  ;;  %v2315_v22 = vpop.f32.mrb[2].mxu0  ;;  %v1103_v24 = vsub.f32 %v498_v44, %v3231_v26 }
 0x119   :  { %v1164_v30 = vsel %vm322_vm0, %v1132_v42, 0.0  ;;  %v1102_v32 = vsub.f32 %v2315_v22, %v3234_v29  ;;  %v411_v35 = vpop.f32.mrb[3].mxu0  ;;  %v1136_v31 = vmul.f32 %v1104_v17, %v1104_v17  ;;  %v3300_v22 = vmul.f32 %v3207_v16, %v3190_v7 }
 0x11a   :  { %v1163_v41 = vsel %vm322_vm0, %v1131_v49, 0.0  ;;  %v1101_v43 = vsub.f32 %v411_v35, %v3238_v34  ;;  %v2329_v46 = vpop.f32.mrb[2].mxu1  ;;  %v1135_v58 = vmul.f32 %v1103_v24, %v1103_v24  ;;  %v3305_v24 = vmul.f32 %v3209_v40, %v3192_v8  ;;  %v270_v35 = vpop.permute.xlu1 %269 }
 0x11b   :  { %v1165_v48 = vadd.f32 %v1164_v30, %v1163_v41  ;;  %v1106_v53 = vsub.f32 %v2329_v46, %v3244_v39  ;;  %v508_v54 = vpop.f32.mrb[3].mxu1  ;;  %v1134_v55 = vmul.f32 %v1102_v32, %v1102_v32  ;;  %v3314_v7 = vmul.f32 %v3209_v40, %v3218_v20 }
 0x11c   :  { %v1133_v56 = vmul.f32 %v1101_v43, %v1101_v43  ;;  %v2340_v57 = vpop.f32.mrb[4].mxu0  ;;  %v1105_v59 = vsub.f32 %v508_v54, %v3250_v47  ;;  %v1170_v38 = vsel %vm322_vm0, %v1135_v58, 0.0  ;;  %v3310_v43 = vmul.f32 %v3207_v16, %v3213_v18  ;;  %v266_v54 = vpop.permute.xlu0 %265 }
 0x11d   :  { %v1108_v62 = vsub.f32 %v2340_v57, %v3254_v27  ;;  %v595_v63 = vpop.f32.mrb[5].mxu0  ;;  %v1168_v36 = vsel %vm322_vm0, %v1134_v55, 0.0  ;;  %v1172_v8 = vsel %vm322_vm0, %v1136_v31, 0.0  ;;  %v1138_v55 = vmul.f32 %v1106_v53, %v1106_v53 }
 0x11e   :  { %v1166_v10 = vsel %vm322_vm0, %v1133_v56, 0.0  ;;  %v1107_v14 = vsub.f32 %v595_v63, %v3259_v37  ;;  %v2354_v15 = vpop.f32.mrb[4].mxu1  ;;  %v1137_v4 = vmul.f32 %v1105_v59, %v1105_v59  ;;  %v3324_v18 = vmul.f32 %v3223_v51, %v3198_v11 }
 0x11f   :  { %v1167_v28 = vadd.f32 %v1166_v10, %v1165_v48  ;;  %v3291_v33 = vsub.f32 %v2354_v15, %v3264_v50  ;;  %v692_v1 = vpop.f32.mrb[5].mxu1  ;;  %v3331_v15 = vmul.f32 %v3225_v23, %v3202_v13  ;;  %v3346_v13 = vmul.f32 %v3225_v23, %v3247_v45 }
 0x120   :  { %v2343_v42 = vpop.f32.mrb[6].mxu0  ;;  %v3296_v44 = vsub.f32 %v692_v1, %v3267_v52  ;;  %v1174_v56 = vsel %vm322_vm0, %v1137_v4, 0.0  ;;  %v1139_v10 = vmul.f32 %v1107_v14, %v1107_v14  ;;  %v3338_v1 = vmul.f32 %v3223_v51, %v3241_v5 }
 0x121   :  { %v1169_v49 = vadd.f32 %v1168_v36, %v1167_v28  ;;  %v1110_v6 = vsub.f32 %v2343_v42, %v3273_v61  ;;  %v605_v17 = vpop.f32.mrb[7].mxu0  ;;  %v1176_v14 = vsel %vm322_vm0, %v1138_v55, 0.0  ;;  %v3358_v45 = vmul.f32 %v3209_v40, %v258_v2 }
 0x122   :  { %v1109_v30 = vsub.f32 %v605_v17, %v3278_v3  ;;  %v2357_v32 = vpop.f32.mrb[6].mxu1 }
 0x123   :  { %v1171_v41 = vadd.f32 %v1170_v38, %v1169_v49  ;;  %v3317_v46 = vsub.f32 %v2357_v32, %v3283_v12  ;;  %v702_v48 = vpop.f32.mrb[7].mxu1  ;;  %v1140_v38 = vmul.f32 %v1108_v62, %v1108_v62  ;;  %v281_v49 = vpop.permute.xlu1 %280  ;;  %v1178_v62 = vsel %vm322_vm0, %v1139_v10, 0.0 }
 0x124   :  { %v2368_v57 = vpop.f32.mrb[8].mxu0  ;;  %v1113_v58 = vsub.f32 %v702_v48, %v3288_v0  ;;  %v277_v48 = vpop.permute.xlu0 %276 }
 0x125   :  { %v1173_v59 = vadd.f32 %v1172_v8, %v1171_v41  ;;  %v3327_v20 = vsub.f32 %v2368_v57, %v3300_v22  ;;  %v789_v63 = vpop.f32.mrb[9].mxu0  ;;  %v3353_v41 = vmul.f32 %v3207_v16, %v262_v60  ;;  %v1141_v8 = vmul.f32 %v1109_v30, %v1109_v30 }
 0x126   :  { %v3334_v53 = vsub.f32 %v789_v63, %v3305_v24  ;;  %v2382_v28 = vpop.f32.mrb[8].mxu1  ;;  %v1180_v60 = vsel %vm322_vm0, %v1140_v38, 0.0  ;;  %v3369_v10 = vmul.f32 %v3209_v40, %v277_v48  ;;  %v3382_v40 = vmul.f32 %v3225_v23, %v266_v54 }
 0x127   :  { %v1175_v31 = vadd.f32 %v1174_v56, %v1173_v59  ;;  %v3341_v11 = vsub.f32 %v2382_v28, %v3310_v43  ;;  %v886_v36 = vpop.f32.mrb[9].mxu1  ;;  %v3364_v28 = vmul.f32 %v3207_v16, %v281_v49  ;;  %v289_v2 = vpop.permute.xlu1 %288  ;;  %v1182_v49 = vsel %vm322_vm0, %v1141_v8, 0.0 }
 0x128   :  { %v2371_v42 = vpop.f32.mrb[10].mxu0  ;;  %v3349_v4 = vsub.f32 %v886_v36, %v3314_v7  ;;  %v285_v16 = vpop.permute.xlu0 %284  ;;  %v1144_v8 = vmul.f32 %v3291_v33, %v3291_v33 }
 0x129   :  { %v1177_v17 = vadd.f32 %v1176_v14, %v1175_v31  ;;  %v1118_v5 = vsub.f32 %v2371_v42, %v3324_v18  ;;  %v799_v32 = vpop.f32.mrb[11].mxu0  ;;  %v1142_v31 = vmul.f32 %v1110_v6, %v1110_v6  ;;  %v1143_v6 = vmul.f32 %v3296_v44, %v3296_v44 }
 0x12a   :  { %v1117_v55 = vsub.f32 %v799_v32, %v3331_v15  ;;  %v2385_v56 = vpop.f32.mrb[10].mxu1  ;;  %v3375_v32 = vmul.f32 %v3223_v51, %v270_v35  ;;  %v3388_v35 = vmul.f32 %v3223_v51, %v289_v2  ;;  %v3397_v54 = vmul.f32 %v3225_v23, %v285_v16 }
 0x12b   :  { %v1179_v57 = vadd.f32 %v1178_v62, %v1177_v17  ;;  %v3361_v59 = vsub.f32 %v2385_v56, %v3338_v1  ;;  %v896_v63 = vpop.f32.mrb[11].mxu1  ;;  %v1186_v51 = vsel %vm322_vm0, %v1143_v6, 0.0  ;;  %v1145_v2 = vmul.f32 %v1113_v58, %v1113_v58 }
 0x12c   :  { %v2396_v36 = vpop.f32.mrb[12].mxu0  ;;  %v1121_v30 = vsub.f32 %v896_v63, %v3346_v13  ;;  %v1184_v63 = vsel %vm322_vm0, %v1142_v31, 0.0  ;;  %v1188_v23 = vsel %vm322_vm0, %v1144_v8, 0.0  ;;  %v1146_v16 = vmul.f32 %v3317_v46, %v3317_v46 }
 0x12d   :  { %v1181_v14 = vadd.f32 %v1180_v60, %v1179_v57  ;;  %v3372_v42 = vsub.f32 %v2396_v36, %v3353_v41  ;;  %v983_v17 = vpop.f32.mrb[13].mxu0  ;;  %v1147_v58 = vmul.f32 %v3334_v53, %v3334_v53  ;;  %v1190_v6 = vsel %vm322_vm0, %v1145_v2, 0.0 }
 0x12e   :  { %v1123_v38 = vsub.f32 %v983_v17, %v3358_v45  ;;  %v2410_v48 = vpop.f32.mrb[12].mxu1  ;;  %v1150_v9 = vmul.f32 %v1118_v5, %v1118_v5  ;;  %v1151_v53 = vmul.f32 %v3349_v4, %v3349_v4 }
 0x12f   :  { %v1183_v62 = vadd.f32 %v1182_v49, %v1181_v14  ;;  %v3385_v56 = vsub.f32 %v2410_v48, %v3364_v28  ;;  %v1080_v57 = vpop.f32.mrb[13].mxu1  ;;  %v1194_v8 = vsel %vm322_vm0, %v1147_v58, 0.0  ;;  %v1153_v58 = vmul.f32 %v1121_v30, %v1121_v30 }
 0x130   :  { %v3394_v44 = vsub.f32 %v1080_v57, %v3369_v10  ;;  %v2399_v60 = vpop.f32.mrb[14].mxu0 }
 0x131   :  { %v1185_v36 = vadd.f32 %v1184_v63, %v1183_v62  ;;  %v3400_v14 = vsub.f32 %v2399_v60, %v3375_v32  ;;  %v993_v17 = vpop.f32.mrb[15].mxu0 }
 0x132   :  { %v3404_v31 = vsub.f32 %v993_v17, %v3382_v40  ;;  %v2413_v49 = vpop.f32.mrb[14].mxu1  ;;  %v1192_v17 = vsel %vm322_vm0, %v1146_v16, 0.0  ;;  %v1200_v16 = vsel %vm322_vm0, %v1150_v9, 0.0 }
 0x133   :  { %v1187_v33 = vadd.f32 %v1186_v51, %v1185_v36  ;;  %v3407_v48 = vsub.f32 %v2413_v49, %v3388_v35  ;;  %v1090_v57 = vpop.f32.mrb[15].mxu1  ;;  %v1148_v36 = vmul.f32 %v3327_v20, %v3327_v20  ;;  %v1149_v49 = vmul.f32 %v1117_v55, %v1117_v55 }
 0x134   :  { %v3413_v62 = vsub.f32 %v1090_v57, %v3397_v54  ;;  %v1152_v20 = vmul.f32 %v3341_v11, %v3341_v11  ;;  %v1202_v55 = vsel %vm322_vm0, %v1151_v53, 0.0  ;;  %v1206_v53 = vsel %vm322_vm0, %v1153_v58, 0.0 }
 0x135   :  { %v1189_v63 = vadd.f32 %v1188_v23, %v1187_v33  ;;  %v1196_v57 = vsel %vm322_vm0, %v1148_v36, 0.0  ;;  %v1198_v2 = vsel %vm322_vm0, %v1149_v49, 0.0 }
 0x137   :  { %v1191_v60 = vadd.f32 %v1190_v6, %v1189_v63 }
 0x139   :  { %v1193_v51 = vadd.f32 %v1192_v17, %v1191_v60 }
 0x13b   :  { %v1195_v46 = vadd.f32 %v1194_v8, %v1193_v51  ;;  %v1204_v51 = vsel %vm322_vm0, %v1152_v20, 0.0  ;;  %v1154_v8 = vmul.f32 %v3361_v59, %v3361_v59  ;;  %v1156_v59 = vmul.f32 %v3372_v42, %v3372_v42 }
 0x13d   :  { %v1197_v33 = vadd.f32 %v1196_v57, %v1195_v46 }
 0x13f   :  { %v1199_v23 = vadd.f32 %v1198_v2, %v1197_v33 }
 0x141   :  { %v1201_v63 = vadd.f32 %v1200_v16, %v1199_v23  ;;  %v2424_v6 = vpop.f32.mrb[16].mxu0 }
 0x142   :  { %v1916_v60 = vsub.f32 %v2424_v6, %v3216_v19  ;;  %v1301_v5 = vpop.f32.mrb[17].mxu0  ;;  %v1155_v19 = vmul.f32 %v1123_v38, %v1123_v38  ;;  %v1208_v6 = vsel %vm322_vm0, %v1154_v8, 0.0  ;;  %v1158_v8 = vmul.f32 %v3400_v14, %v3400_v14 }
 0x143   :  { %v1203_v36 = vadd.f32 %v1202_v55, %v1201_v63  ;;  %v1915_v17 = vsub.f32 %v1301_v5, %v3221_v21  ;;  %v2438_v4 = vpop.f32.mrb[16].mxu1 }
 0x144   :  { %v1948_v11 = vmul.f32 %v1916_v60, %v1916_v60  ;;  %v1920_v9 = vsub.f32 %v2438_v4, %v3228_v25  ;;  %v1386_v49 = vpop.f32.mrb[17].mxu1  ;;  %v1210_v42 = vsel %vm322_vm0, %v1155_v19, 0.0  ;;  %v1216_v14 = vsel %vm322_vm0, %v1158_v8, 0.0 }
 0x145   :  { %v1205_v46 = vadd.f32 %v1204_v51, %v1203_v36  ;;  %v1947_v57 = vmul.f32 %v1915_v17, %v1915_v17  ;;  %v2427_v33 = vpop.f32.mrb[18].mxu0  ;;  %v1919_v30 = vsub.f32 %v1386_v49, %v3231_v26  ;;  %v1157_v17 = vmul.f32 %v3404_v31, %v3404_v31 }
 0x146   :  { %v1980_v21 = vsel %vm322_vm0, %v1948_v11, 0.0  ;;  %v1918_v2 = vsub.f32 %v2427_v33, %v3234_v29  ;;  %v1311_v23 = vpop.f32.mrb[19].mxu0  ;;  %v1212_v51 = vsel %vm322_vm0, %v1156_v59, 0.0  ;;  %v1952_v11 = vmul.f32 %v1920_v9, %v1920_v9 }
 0x147   :  { %v1207_v20 = vadd.f32 %v1206_v53, %v1205_v46  ;;  %v1979_v25 = vsel %vm322_vm0, %v1947_v57, 0.0  ;;  %v1917_v16 = vsub.f32 %v1311_v23, %v3238_v34  ;;  %v2441_v63 = vpop.f32.mrb[18].mxu1  ;;  %v1951_v38 = vmul.f32 %v1919_v30, %v1919_v30 }
 0x148   :  { %v1981_v26 = vadd.f32 %v1980_v21, %v1979_v25  ;;  %v1922_v55 = vsub.f32 %v2441_v63, %v3244_v39  ;;  %v1396_v58 = vpop.f32.mrb[19].mxu1  ;;  %v1950_v5 = vmul.f32 %v1918_v2, %v1918_v2  ;;  %v1159_v33 = vmul.f32 %v3394_v44, %v3394_v44 }
 0x149   :  { %v1209_v60 = vadd.f32 %v1208_v6, %v1207_v20  ;;  %v1949_v29 = vmul.f32 %v1917_v16, %v1917_v16  ;;  %v1921_v36 = vsub.f32 %v1396_v58, %v3250_v47  ;;  %v1986_v47 = vsel %vm322_vm0, %v1951_v38, 0.0 }
 0x14a   :  { %v1984_v46 = vsel %vm322_vm0, %v1950_v5, 0.0  ;;  %v1214_v31 = vsel %vm322_vm0, %v1157_v17, 0.0  ;;  %v1160_v53 = vmul.f32 %v3385_v56, %v3385_v56  ;;  %v1988_v2 = vsel %vm322_vm0, %v1952_v11, 0.0 }
 0x14b   :  { %v1211_v4 = vadd.f32 %v1210_v42, %v1209_v60  ;;  %v1982_v34 = vsel %vm322_vm0, %v1949_v29, 0.0  ;;  %v1953_v57 = vmul.f32 %v1921_v36, %v1921_v36  ;;  %v1954_v23 = vmul.f32 %v1922_v55, %v1922_v55 }
 0x14c   :  { %v1983_v39 = vadd.f32 %v1982_v34, %v1981_v26  ;;  %v1218_v25 = vsel %vm322_vm0, %v1159_v33, 0.0  ;;  %v1161_v44 = vmul.f32 %v3413_v62, %v3413_v62  ;;  %v1162_v56 = vmul.f32 %v3407_v48, %v3407_v48 }
 0x14d   :  { %v1213_v49 = vadd.f32 %v1212_v51, %v1211_v4  ;;  %v1990_v59 = vsel %vm322_vm0, %v1953_v57, 0.0  ;;  %v1220_v55 = vsel %vm322_vm0, %v1160_v53, 0.0  ;;  %v1992_v62 = vsel %vm322_vm0, %v1954_v23, 0.0 }
 0x14e   :  { %v1985_v30 = vadd.f32 %v1984_v46, %v1983_v39  ;;  %v1222_v48 = vsel %vm322_vm0, %v1161_v44, 0.0 }
 0x14f   :  { %v1215_v19 = vadd.f32 %v1214_v31, %v1213_v49 }
 0x150   :  { %v1987_v21 = vadd.f32 %v1986_v47, %v1985_v30 }
 0x151   :  { %v1217_v9 = vadd.f32 %v1216_v14, %v1215_v19  ;;  %v2452_v20 = vpop.f32.mrb[20].mxu0 }
 0x152   :  { %v1989_v16 = vadd.f32 %v1988_v2, %v1987_v21  ;;  %v1924_v63 = vsub.f32 %v2452_v20, %v3254_v27  ;;  %v1471_v6 = vpop.f32.mrb[21].mxu0 }
 0x153   :  { %v1923_v26 = vsub.f32 %v1471_v6, %v3259_v37  ;;  %v2466_v38 = vpop.f32.mrb[20].mxu1  ;;  %v1219_v58 = vadd.f32 %v1218_v25, %v1217_v9 }
 0x154   :  { %v1991_v60 = vadd.f32 %v1990_v59, %v1989_v16  ;;  %v1956_v5 = vmul.f32 %v1924_v63, %v1924_v63  ;;  %v1928_v29 = vsub.f32 %v2466_v38, %v3264_v50  ;;  %v1556_v36 = vpop.f32.mrb[21].mxu1  ;;  %v1224_v50 = vsel %vm322_vm0, %v1162_v56, 0.0 }
 0x155   :  { %v1955_v42 = vmul.f32 %v1923_v26, %v1923_v26  ;;  %v2455_v17 = vpop.f32.mrb[22].mxu0  ;;  %v1927_v27 = vsub.f32 %v1556_v36, %v3267_v52  ;;  %v1221_v4 = vadd.f32 %v1220_v55, %v1219_v58 }
 0x156   :  { %v1993_v34 = vadd.f32 %v1992_v62, %v1991_v60  ;;  %v1926_v37 = vsub.f32 %v2455_v17, %v3273_v61  ;;  %v1481_v51 = vpop.f32.mrb[23].mxu0  ;;  %v1996_v46 = vsel %vm322_vm0, %v1956_v5, 0.0  ;;  %v1960_v9 = vmul.f32 %v1928_v29, %v1928_v29 }
 0x157   :  { %v1994_v8 = vsel %vm322_vm0, %v1955_v42, 0.0  ;;  %v1925_v39 = vsub.f32 %v1481_v51, %v3278_v3  ;;  %v1223_v11 = vadd.f32 %v1222_v48, %v1221_v4  ;;  %v2469_v49 = vpop.f32.mrb[22].mxu1  ;;  %v1959_v57 = vmul.f32 %v1927_v27, %v1927_v27 }
 0x158   :  { %v1995_v47 = vadd.f32 %v1994_v8, %v1993_v34  ;;  %v1930_v52 = vsub.f32 %v2469_v49, %v3283_v12  ;;  %v1566_v33 = vpop.f32.mrb[23].mxu1  ;;  %v1958_v31 = vmul.f32 %v1926_v37, %v1926_v37  ;;  %v2004_v12 = vsel %vm322_vm0, %v1960_v9, 0.0 }
 0x159   :  { %v1957_v30 = vmul.f32 %v1925_v39, %v1925_v39  ;;  %v1225_v19 = vadd.f32 %v1224_v50, %v1223_v11  ;;  %v1929_v61 = vsub.f32 %v1566_v33, %v3288_v0  ;;  %v2002_v2 = vsel %vm322_vm0, %v1959_v57, 0.0 }
 0x15a   :  { %v1997_v53 = vadd.f32 %v1996_v46, %v1995_v47  ;;  %v2000_v21 = vsel %vm322_vm0, %v1958_v31, 0.0  ;;  %v1962_v25 = vmul.f32 %v1930_v52, %v1930_v52 }
 0x15b   :  { %v1998_v14 = vsel %vm322_vm0, %v1957_v30, 0.0  ;;  %1226 = vadd.xlane.f32.xlu0 %v1225_v19  ;;  %v1961_v23 = vmul.f32 %v1929_v61, %v1929_v61 }
 0x15c   :  { %v1999_v3 = vadd.f32 %v1998_v14, %v1997_v53  ;;  %v2008_v5 = vsel %vm322_vm0, %v1962_v25, 0.0 }
 0x15d   :  { %v2006_v44 = vsel %vm322_vm0, %v1961_v23, 0.0 }
 0x15e   :  { %v2001_v59 = vadd.f32 %v2000_v21, %v1999_v3 }
 0x160   :  { %v2003_v20 = vadd.f32 %v2002_v2, %v2001_v59 }
 0x161   :  { %v2480_v16 = vpop.f32.mrb[24].mxu0 }
 0x162   :  { %v2005_v0 = vadd.f32 %v2004_v12, %v2003_v20  ;;  %v1932_v63 = vsub.f32 %v2480_v16, %v3300_v22  ;;  %v1641_v6 = vpop.f32.mrb[25].mxu0 }
 0x163   :  { %v1931_v56 = vsub.f32 %v1641_v6, %v3305_v24  ;;  %v2494_v26 = vpop.f32.mrb[24].mxu1 }
 0x164   :  { %v2007_v38 = vadd.f32 %v2006_v44, %v2005_v0  ;;  %v1964_v58 = vmul.f32 %v1932_v63, %v1932_v63  ;;  %v1936_v55 = vsub.f32 %v2494_v26, %v3310_v43  ;;  %v1726_v60 = vpop.f32.mrb[25].mxu1 }
 0x165   :  { %v1963_v29 = vmul.f32 %v1931_v56, %v1931_v56  ;;  %v2483_v36 = vpop.f32.mrb[26].mxu0  ;;  %v1935_v62 = vsub.f32 %v1726_v60, %v3314_v7 }
 0x166   :  { %v2009_v42 = vadd.f32 %v2008_v5, %v2007_v38  ;;  %v1934_v17 = vsub.f32 %v2483_v36, %v3324_v18  ;;  %v1651_v27 = vpop.f32.mrb[27].mxu0  ;;  %v2012_v48 = vsel %vm322_vm0, %v1964_v58, 0.0  ;;  %v1968_v46 = vmul.f32 %v1936_v55, %v1936_v55 }
 0x167   :  { %v2010_v22 = vsel %vm322_vm0, %v1963_v29, 0.0  ;;  %v1933_v24 = vsub.f32 %v1651_v27, %v3331_v15  ;;  %v2497_v4 = vpop.f32.mrb[26].mxu1  ;;  %v1967_v39 = vmul.f32 %v1935_v62, %v1935_v62 }
 0x168   :  { %v2011_v34 = vadd.f32 %v2010_v22, %v2009_v42  ;;  %v1938_v43 = vsub.f32 %v2497_v4, %v3338_v1  ;;  %v1736_v37 = vpop.f32.mrb[27].mxu1  ;;  %v1966_v51 = vmul.f32 %v1934_v17, %v1934_v17  ;;  %v2020_v1 = vsel %vm322_vm0, %v1968_v46, 0.0 }
 0x169   :  { %v1965_v8 = vmul.f32 %v1933_v24, %v1933_v24  ;;  %v1937_v7 = vsub.f32 %v1736_v37, %v3346_v13  ;;  %v2018_v15 = vsel %vm322_vm0, %v1967_v39, 0.0 }
 0x16a   :  { %v2013_v11 = vadd.f32 %v2012_v48, %v2011_v34  ;;  %v2016_v49 = vsel %vm322_vm0, %v1966_v51, 0.0  ;;  %v1970_v33 = vmul.f32 %v1938_v43, %v1938_v43 }
 0x16b   :  { %v2014_v18 = vsel %vm322_vm0, %v1965_v8, 0.0  ;;  %v1969_v47 = vmul.f32 %v1937_v7, %v1937_v7 }
 0x16c   :  { %v2015_v50 = vadd.f32 %v2014_v18, %v2013_v11  ;;  %v2024_v23 = vsel %vm322_vm0, %v1970_v33, 0.0 }
 0x16d   :  { %v2022_v31 = vsel %vm322_vm0, %v1969_v47, 0.0  ;;  %v3544_v47 = vld [vmem:[#allocation12_spill] sm:$0xff] }
 0x16e   :  { %v2017_v57 = vadd.f32 %v2016_v49, %v2015_v50  ;;  %vm2052_vm6 = vcmp.eq.s32.totalorder %v3544_v47, 1  ;;  %vm2051_vm7 = vcmp.eq.s32.totalorder %v3544_v47, 0 }
 0x170   :  { %v2019_v52 = vadd.f32 %v2018_v15, %v2017_v57 }
 0x171   :  { %v2508_v30 = vpop.f32.mrb[28].mxu0 }
 0x172   :  { %v2021_v19 = vadd.f32 %v2020_v1, %v2019_v52  ;;  %v1940_v13 = vsub.f32 %v2508_v30, %v3353_v41  ;;  %v1811_v61 = vpop.f32.mrb[29].mxu0 }
 0x173   :  { %v1939_v53 = vsub.f32 %v1811_v61, %v3358_v45  ;;  %v2522_v14 = vpop.f32.mrb[28].mxu1 }
 0x174   :  { %v2023_v3 = vadd.f32 %v2022_v31, %v2021_v19  ;;  %v1972_v21 = vmul.f32 %v1940_v13, %v1940_v13  ;;  %v1944_v9 = vsub.f32 %v2522_v14, %v3364_v28  ;;  %v1896_v2 = vpop.f32.mrb[29].mxu1 }
 0x175   :  { %v1971_v59 = vmul.f32 %v1939_v53, %v1939_v53  ;;  %v2511_v20 = vpop.f32.mrb[30].mxu0  ;;  %v1943_v12 = vsub.f32 %v1896_v2, %v3369_v10 }
 0x176   :  { %v2025_v25 = vadd.f32 %v2024_v23, %v2023_v3  ;;  %v1942_v44 = vsub.f32 %v2511_v20, %v3375_v32  ;;  %v1821_v16 = vpop.f32.mrb[31].mxu0  ;;  %v2028_v63 = vsel %vm322_vm0, %v1972_v21, 0.0  ;;  %v1976_v29 = vmul.f32 %v1944_v9, %v1944_v9 }
 0x177   :  { %v2026_v41 = vsel %vm322_vm0, %v1971_v59, 0.0  ;;  %v1941_v45 = vsub.f32 %v1821_v16, %v3382_v40  ;;  %v2525_v0 = vpop.f32.mrb[30].mxu1  ;;  %v1975_v58 = vmul.f32 %v1943_v12, %v1943_v12 }
 0x178   :  { %v2027_v6 = vadd.f32 %v2026_v41, %v2025_v25  ;;  %v1946_v28 = vsub.f32 %v2525_v0, %v3388_v35  ;;  %v1906_v56 = vpop.f32.mrb[31].mxu1  ;;  %v1974_v26 = vmul.f32 %v1942_v44, %v1942_v44  ;;  %v2036_v35 = vsel %vm322_vm0, %v1976_v29, 0.0 }
 0x179   :  { %v1973_v38 = vmul.f32 %v1941_v45, %v1941_v45  ;;  %v1945_v10 = vsub.f32 %v1906_v56, %v3397_v54  ;;  %v2034_v40 = vsel %vm322_vm0, %v1975_v58, 0.0 }
 0x17a   :  { %v2029_v55 = vadd.f32 %v2028_v63, %v2027_v6  ;;  %v2032_v5 = vsel %vm322_vm0, %v1974_v26, 0.0  ;;  %v1978_v17 = vmul.f32 %v1946_v28, %v1946_v28 }
 0x17b   :  { %v2030_v32 = vsel %vm322_vm0, %v1973_v38, 0.0  ;;  %v1977_v36 = vmul.f32 %v1945_v10, %v1945_v10 }
 0x17c   :  { %v2031_v60 = vadd.f32 %v2030_v32, %v2029_v55  ;;  %v2040_v54 = vsel %vm322_vm0, %v1978_v17, 0.0 }
 0x17d   :  { %v2038_v27 = vsel %vm322_vm0, %v1977_v36, 0.0 }
 0x17e   :  { %v2033_v62 = vadd.f32 %v2032_v5, %v2031_v60 }
 0x180   :  { %v2035_v42 = vadd.f32 %v2034_v40, %v2033_v62 }
 0x182   :  { %v2037_v22 = vadd.f32 %v2036_v35, %v2035_v42 }
 0x184   :  { %v2039_v24 = vadd.f32 %v2038_v27, %v2037_v22 }
 0x186   :  { %v2041_v4 = vadd.f32 %v2040_v54, %v2039_v24 }
 0x188   :  { %2042 = vadd.xlane.f32.xlu1 %v2041_v4 }
 0x1e8   :  { %v1227_v48 = vpop.xlane.xlu0 %1226 }
 0x1e9   :  { %v1228_v34 = vrot.slane %v1227_v48, 4 }
 0x1eb   :  { %v1229_v43 = vadd.f32 %v1228_v34, %v1227_v48 }
 0x1ed   :  { %v1230_v37 = vrot.slane %v1229_v43, 2 }
 0x1ef   :  { %v1231_v51 = vadd.f32 %v1230_v37, %v1229_v43 }
 0x1f1   :  { %v1232_v8 = vrot.slane %v1231_v51, 1 }
 0x1f3   :  { %v1233_v39 = vadd.f32 %v1232_v8, %v1231_v51 }
 0x1f5   :  { %2686 = vpush %v1233_v39 }
 0x215   :  { %v2043_v7 = vpop.xlane.xlu1 %2042 }
 0x216   :  { %v2044_v11 = vrot.slane %v2043_v7, 4 }
 0x218   :  { %v2045_v18 = vadd.f32 %v2044_v11, %v2043_v7 }
 0x21a   :  { %v2046_v50 = vrot.slane %v2045_v18, 2 }
 0x21c   :  { %v2047_v49 = vadd.f32 %v2046_v50, %v2045_v18 }
 0x21e   :  { %v2048_v46 = vrot.slane %v2047_v49, 1 }
 0x220   :  { %v2049_v15 = vadd.f32 %v2048_v46, %v2047_v49 }
 0x222   :  { %2688 = vpush %v2049_v15 }
 0x226   :  { %s2687_s2 = spop %2686 }
 0x227   :  { %v2055_v52 = vstv %s2687_s2 }
 0x253   :  { %s2689_s23 = spop %2688 }
 0x254   :  { %v2053_v57 = vstv %s2689_s23 }
 0x255   :  { %v2054_v1 = vsel %vm2052_vm6, %v2053_v57, 0.0 }
 0x256   :  { %v2056_v33 = vsel %vm2051_vm7, %v2055_v52, %v2054_v1 }
 0x257   :  { %2057 = vst [vmem:[#allocation8] sm:$0xff] %v2056_v33 }
 0x258   :  { %2774 = shalt.err (!%p2771_p0)
}
 0x259   :  { %s2775_s27 = scalar_lea.hbm %s3538_s3, 128 }
 0x25a   :  { %p2776_p1 = scmp.ne.s32.totalorder %s3538_s3, %s2775_s27  ;;  %p2779_p2 = scmp.lt.u32.totalorder %s2775_s27, %s3538_s3 }
 0x25c   :  { %p2781_p3 = pnand %p2779_p2, %p2776_p1 }
 0x25e   :  { %2784 = shalt.err (!%p2781_p3)
}
 0x25f   :  { %2067 = dma.vmem_to_hbm [thread:$0]  %s2065_s22, 128, %s3538_s3, [#allocation4]  }
 0x260   :  { %2789 = dma.done.wait [#allocation4], 128  }
 0x261   :  { %2790 = vsyncadd [#allocation4], 4294967168 }
 0x262   :  { %2071 = vsyncpa [#allocation3], 1 }
 0x263   :  { %2072 = vsyncpa [#allocation6], 1 }
 0x264   :  { %2073 = vsyncpa [#allocation4], 1 }

</bundles_post_ra>
